<compile_context>
chip_gen: v7x
topology: tpu7x:2x2x1
jax: 0.10.0
libtpu: 0.0.40
codegen_flags: <defaults>
</compile_context>

<pallas_src>
import jax
import jax.numpy as jnp
from jax.experimental import pallas as pl
from jax.experimental.pallas import tpu as pltpu

LANE = 128


def _mlp_kernel(x_ref, w1_ref, b1_ref, w2_ref, b2_ref, w3_ref, b3_ref,
                w4_ref, b4_ref, out_ref):
    # bf16 MXU operands, f32 accumulation; bias add + ReLU stay f32 on the VPU.
    h = jnp.dot(x_ref[...], w1_ref[...], preferred_element_type=jnp.float32)
    h = jnp.maximum(h + b1_ref[...], 0.0)
    h = jnp.dot(h.astype(jnp.bfloat16), w2_ref[...],
                preferred_element_type=jnp.float32)
    h = jnp.maximum(h + b2_ref[...], 0.0)
    h = jnp.dot(h.astype(jnp.bfloat16), w3_ref[...],
                preferred_element_type=jnp.float32)
    h = jnp.maximum(h + b3_ref[...], 0.0)
    h = jnp.dot(h.astype(jnp.bfloat16), w4_ref[...],
                preferred_element_type=jnp.float32)
    out_ref[...] = (h + b4_ref[...]).astype(out_ref.dtype)


def classifier_forward(x, params, *, tb=None):
    """Fused 4-layer MLP classifier. x: (B, in_shape) f32 -> (B, out) f32 logits."""
    B, D = x.shape
    (w1, b1), (w2, b2), (w3, b3), (w4, b4) = params
    out_dim = w4.shape[1]

    # --- wrapper-side layout plumbing --------------------------------------
    # 1) Lane-dense output: pad the final layer N to a multiple of 128 so the
    #    writeback uses unmasked vector stores and the last matmul has dense N.
    out_pad = max(LANE, pl.cdiv(out_dim, LANE) * LANE)
    w4p = jnp.zeros((w4.shape[0], out_pad), w4.dtype).at[:, :out_dim].set(w4)
    b4p = jnp.zeros((1, out_pad), b4.dtype).at[:, :out_dim].set(b4)

    # 2) bf16 MXU operands (accumulation stays f32 inside the kernel).
    xw = x.astype(jnp.bfloat16)
    w1c = w1.astype(jnp.bfloat16)
    w2c = w2.astype(jnp.bfloat16)
    w3c = w3.astype(jnp.bfloat16)
    w4c = w4p.astype(jnp.bfloat16)

    # 3) Large batch tiles: one grid step for small batches (8-aligned), else
    #    1024-row tiles. Per-step VMEM: x tile ~tb*D*2B, out tile ~tb*out_pad*4B,
    #    weights ~200 KiB -> tb=1024 is well inside even v7x's 64 MiB.
    if tb is None:
        b8 = max(8, pl.cdiv(B, 8) * 8)
        tb = b8 if b8 <= 1024 else 1024
    Bp = pl.cdiv(B, tb) * tb
    if Bp != B:
        xw = jnp.pad(xw, ((0, Bp - B), (0, 0)))

    def full(arr):
        # Resident weight/bias blocks: whole array, same block every grid step,
        # so they are DMA'd into VMEM once and never revisited.
        return pl.BlockSpec(arr.shape, lambda i: (0,) * arr.ndim)

    grid_spec = pltpu.PrefetchScalarGridSpec(
        num_scalar_prefetch=0,
        grid=(Bp // tb,),
        in_specs=[
            pl.BlockSpec((tb, D), lambda i: (i, 0)),
            full(w1c), full(b1),
            full(w2c), full(b2),
            full(w3c), full(b3),
            full(w4c), full(b4p),
        ],
        out_specs=pl.BlockSpec((tb, out_pad), lambda i: (i, 0)),
    )

    # Advisory cost hint for XLA's scheduler around the custom call.
    hidden = [w1.shape[1], w2.shape[1], w3.shape[1], out_pad]
    flops = 2 * Bp * (D * hidden[0] + hidden[0] * hidden[1]
                      + hidden[1] * hidden[2] + hidden[2] * hidden[3])
    bytes_accessed = (xw.size * 2
                      + sum(w.size * 2 for w in (w1c, w2c, w3c, w4c))
                      + sum(b.size * 4 for b in (b1, b2, b3, b4p))
                      + Bp * out_pad * 4)
    cost = pl.CostEstimate(flops=flops, transcendentals=0,
                           bytes_accessed=bytes_accessed)

    out = pl.pallas_call(
        _mlp_kernel,
        out_shape=jax.ShapeDtypeStruct((Bp, out_pad), jnp.float32),
        grid_spec=grid_spec,
        compiler_params=pltpu.CompilerParams(
            dimension_semantics=("parallel",)),
        cost_estimate=cost,
    )(xw, w1c, b1, w2c, b2, w3c, b3, w4c, b4p)

    # Slice away the batch padding and the lane padding.
    return out[:B, :out_dim]


def classifier_reference(x, params):
    """Pure-JAX reference with the same bf16-operand / f32-accumulate recipe."""
    h = x.astype(jnp.bfloat16)
    n = len(params)
    for i, (w, b) in enumerate(params):
        h = jnp.dot(h, w.astype(jnp.bfloat16),
                    preferred_element_type=jnp.float32) + b
        if i < n - 1:
            h = jnp.maximum(h, 0.0).astype(jnp.bfloat16)
    return h


def init_params(key, in_shape, split_shape):
    """Deterministic uniform(-0.3, 0.3) init, matching init_weights in the module.

    Weights are stored as (in, out) (i.e. PyTorch's W.T) so the kernel does x @ W.
    """
    dims = [in_shape, 64, 128, 256, sum(split_shape)]
    params = []
    for fan_in, fan_out in zip(dims[:-1], dims[1:]):
        key, kw, kb = jax.random.split(key, 3)
        w = jax.random.uniform(kw, (fan_in, fan_out), jnp.float32, -0.3, 0.3)
        b = jax.random.uniform(kb, (1, fan_out), jnp.float32, -0.3, 0.3)
        params.append((w, b))
    return params


def model_ipnn_forward(x, labels, params, *, split_shape, num_classes):
    """Mirrors MODEL_IPNN.forward up to (and excluding) the IPNN sub-module."""
    logits = classifier_forward(x, params)

    y_trues, select_variables = None, None
    if labels is not None and labels.ndim > 1:
        y_trues = [jax.nn.one_hot(labels[:, 0], num_classes, dtype=jnp.float32)]
        nnn = min(labels.shape[-1], len(split_shape) + 1)
        select_variables = [list(range(nnn - 1))]
        for i in range(1, nnn):
            y_trues.append(jax.nn.one_hot(labels[:, i], 2, dtype=jnp.float32))
            select_variables.append([i - 1])
    elif labels is not None and labels.ndim == 1:
        y_trues = [jax.nn.one_hot(labels, num_classes, dtype=jnp.float32)]

    # TODO(synk): IPNN(forget_num=..., stable_num=...) head not provided in the
    # reference code; loss = sum(outputs['losses']) cannot be reproduced.
    return logits, y_trues, select_variables


if __name__ == "__main__":
    # binary2decimal demo: input = 8 binary digits, split_shape = (10, 2, 2),
    # 10 decimal classes, batch = 16.
    in_shape = 8
    split_shape = (10, 2, 2)
    num_classes = 10
    batch = 16

    key = jax.random.PRNGKey(0)
    k_param, k_x, k_l0, k_l1 = jax.random.split(key, 4)

    params = init_params(k_param, in_shape, split_shape)

    # Binary-digit-like inputs (0/1 floats), multi-column labels.
    x = jax.random.bernoulli(k_x, 0.5, (batch, in_shape)).astype(jnp.float32)
    lab0 = jax.random.randint(k_l0, (batch, 1), 0, num_classes)
    lab_rest = jax.random.randint(k_l1, (batch, len(split_shape)), 0, 2)
    labels = jnp.concatenate([lab0, lab_rest], axis=1)

    logits, y_trues, select_variables = model_ipnn_forward(
        x, labels, params, split_shape=split_shape, num_classes=num_classes)
    logits = jax.block_until_ready(logits)

    # Correctness check against the pure-JAX reference (same bf16/f32 recipe).
    ref = classifier_reference(x, params)
    assert logits.shape == (batch, sum(split_shape))
    assert jnp.allclose(logits, ref, atol=1e-2, rtol=1e-2)
    assert y_trues[0].shape == (batch, num_classes)
    assert all(y.shape == (batch, 2) for y in y_trues[1:])
    assert select_variables[0] == list(range(len(split_shape)))

    print("KERNEL_OK")
</pallas_src>

<mosaic_0001>
module attributes {stable_mosaic.version = 11 : i64} {
  func.func @_mlp_kernel(%arg0: i32, %arg1: memref<16x8xbf16, #tpu.memory_space<vmem>>, %arg2: memref<8x64xbf16, #tpu.memory_space<vmem>>, %arg3: memref<1x64xf32, #tpu.memory_space<vmem>>, %arg4: memref<64x128xbf16, #tpu.memory_space<vmem>>, %arg5: memref<1x128xf32, #tpu.memory_space<vmem>>, %arg6: memref<128x256xbf16, #tpu.memory_space<vmem>>, %arg7: memref<1x256xf32, #tpu.memory_space<vmem>>, %arg8: memref<256x128xbf16, #tpu.memory_space<vmem>>, %arg9: memref<1x128xf32, #tpu.memory_space<vmem>>, %arg10: memref<16x128xf32, #tpu.memory_space<vmem>>) attributes {dimension_semantics = [#tpu.dimension_semantics<parallel>], iteration_bounds = array<i64: 1>, scalar_prefetch = 0 : i64, scratch_operands = 0 : i64, tpu.core_type = #tpu.core_type<tc>, window_params = [{transform_indices = @transform_0, window_bounds = array<i64: 16, 8>}, {pipeline_mode = #tpu.pipeline_mode<synchronous>, transform_indices = @transform_1, window_bounds = array<i64: 8, 64>}, {pipeline_mode = #tpu.pipeline_mode<synchronous>, transform_indices = @transform_2, window_bounds = array<i64: 1, 64>}, {pipeline_mode = #tpu.pipeline_mode<synchronous>, transform_indices = @transform_3, window_bounds = array<i64: 64, 128>}, {pipeline_mode = #tpu.pipeline_mode<synchronous>, transform_indices = @transform_4, window_bounds = array<i64: 1, 128>}, {pipeline_mode = #tpu.pipeline_mode<synchronous>, transform_indices = @transform_5, window_bounds = array<i64: 128, 256>}, {pipeline_mode = #tpu.pipeline_mode<synchronous>, transform_indices = @transform_6, window_bounds = array<i64: 1, 256>}, {pipeline_mode = #tpu.pipeline_mode<synchronous>, transform_indices = @transform_7, window_bounds = array<i64: 256, 128>}, {pipeline_mode = #tpu.pipeline_mode<synchronous>, transform_indices = @transform_8, window_bounds = array<i64: 1, 128>}, {transform_indices = @transform_9, window_bounds = array<i64: 16, 128>}]} {
    %c0 = arith.constant 0 : index
    %c0_0 = arith.constant 0 : index
    %0 = vector.load %arg1[%c0, %c0_0] : memref<16x8xbf16, #tpu.memory_space<vmem>>, vector<16x8xbf16>
    %c0_1 = arith.constant 0 : index
    %c0_2 = arith.constant 0 : index
    %1 = vector.load %arg2[%c0_1, %c0_2] : memref<8x64xbf16, #tpu.memory_space<vmem>>, vector<8x64xbf16>
    %cst = arith.constant dense<0.000000e+00> : vector<16x64xf32>
    %2 = tpu.matmul %0, %1, %cst {dimension_numbers = #tpu.dot_dimension_numbers<[1], [0], [0], [1], [0, 0, 1, 1], [], []>} : vector<16x8xbf16>, vector<8x64xbf16>, vector<16x64xf32> -> vector<16x64xf32>
    %c0_3 = arith.constant 0 : index
    %c0_4 = arith.constant 0 : index
    %3 = vector.load %arg3[%c0_3, %c0_4] : memref<1x64xf32, #tpu.memory_space<vmem>>, vector<1x64xf32>
    %4 = vector.broadcast %3 : vector<1x64xf32> to vector<16x64xf32>
    %5 = arith.addf %2, %4 : vector<16x64xf32>
    %cst_5 = arith.constant 0.000000e+00 : f32
    %6 = vector.broadcast %cst_5 : f32 to vector<16x64xf32>
    %7 = arith.maximumf %5, %6 : vector<16x64xf32>
    %8 = arith.truncf %7 : vector<16x64xf32> to vector<16x64xbf16>
    %c0_6 = arith.constant 0 : index
    %c0_7 = arith.constant 0 : index
    %9 = vector.load %arg4[%c0_6, %c0_7] : memref<64x128xbf16, #tpu.memory_space<vmem>>, vector<64x128xbf16>
    %cst_8 = arith.constant dense<0.000000e+00> : vector<16x128xf32>
    %10 = tpu.matmul %8, %9, %cst_8 {dimension_numbers = #tpu.dot_dimension_numbers<[1], [0], [0], [1], [0, 0, 1, 1], [], []>} : vector<16x64xbf16>, vector<64x128xbf16>, vector<16x128xf32> -> vector<16x128xf32>
    %c0_9 = arith.constant 0 : index
    %c0_10 = arith.constant 0 : index
    %11 = vector.load %arg5[%c0_9, %c0_10] : memref<1x128xf32, #tpu.memory_space<vmem>>, vector<1x128xf32>
    %12 = vector.broadcast %11 : vector<1x128xf32> to vector<16x128xf32>
    %13 = arith.addf %10, %12 : vector<16x128xf32>
    %cst_11 = arith.constant 0.000000e+00 : f32
    %14 = vector.broadcast %cst_11 : f32 to vector<16x128xf32>
    %15 = arith.maximumf %13, %14 : vector<16x128xf32>
    %16 = arith.truncf %15 : vector<16x128xf32> to vector<16x128xbf16>
    %c0_12 = arith.constant 0 : index
    %c0_13 = arith.constant 0 : index
    %17 = vector.load %arg6[%c0_12, %c0_13] : memref<128x256xbf16, #tpu.memory_space<vmem>>, vector<128x256xbf16>
    %cst_14 = arith.constant dense<0.000000e+00> : vector<16x256xf32>
    %18 = tpu.matmul %16, %17, %cst_14 {dimension_numbers = #tpu.dot_dimension_numbers<[1], [0], [0], [1], [0, 0, 1, 1], [], []>} : vector<16x128xbf16>, vector<128x256xbf16>, vector<16x256xf32> -> vector<16x256xf32>
    %c0_15 = arith.constant 0 : index
    %c0_16 = arith.constant 0 : index
    %19 = vector.load %arg7[%c0_15, %c0_16] : memref<1x256xf32, #tpu.memory_space<vmem>>, vector<1x256xf32>
    %20 = vector.broadcast %19 : vector<1x256xf32> to vector<16x256xf32>
    %21 = arith.addf %18, %20 : vector<16x256xf32>
    %cst_17 = arith.constant 0.000000e+00 : f32
    %22 = vector.broadcast %cst_17 : f32 to vector<16x256xf32>
    %23 = arith.maximumf %21, %22 : vector<16x256xf32>
    %24 = arith.truncf %23 : vector<16x256xf32> to vector<16x256xbf16>
    %c0_18 = arith.constant 0 : index
    %c0_19 = arith.constant 0 : index
    %25 = vector.load %arg8[%c0_18, %c0_19] : memref<256x128xbf16, #tpu.memory_space<vmem>>, vector<256x128xbf16>
    %cst_20 = arith.constant dense<0.000000e+00> : vector<16x128xf32>
    %26 = tpu.matmul %24, %25, %cst_20 {dimension_numbers = #tpu.dot_dimension_numbers<[1], [0], [0], [1], [0, 0, 1, 1], [], []>} : vector<16x256xbf16>, vector<256x128xbf16>, vector<16x128xf32> -> vector<16x128xf32>
    %c0_21 = arith.constant 0 : index
    %c0_22 = arith.constant 0 : index
    %27 = vector.load %arg9[%c0_21, %c0_22] : memref<1x128xf32, #tpu.memory_space<vmem>>, vector<1x128xf32>
    %28 = vector.broadcast %27 : vector<1x128xf32> to vector<16x128xf32>
    %29 = arith.addf %26, %28 : vector<16x128xf32>
    %c0_23 = arith.constant 0 : index
    %c0_24 = arith.constant 0 : index
    %30 = vector.load %arg10[%c0_23, %c0_24] : memref<16x128xf32, #tpu.memory_space<vmem>>, vector<16x128xf32>
    tpu.vector_store %arg10[%c0_23, %c0_24], %29 {strides = array<i32>} : memref<16x128xf32, #tpu.memory_space<vmem>>, vector<16x128xf32>,
    return
  }
  func.func @transform_0(%arg0: i32) -> (i32, i32) {
    %c0_i32 = arith.constant 0 : i32
    %c0_i32_0 = arith.constant 0 : i32
    return %arg0, %c0_i32 : i32, i32
  }
  func.func @transform_1(%arg0: i32) -> (i32, i32) {
    %c0_i32 = arith.constant 0 : i32
    %c0_i32_0 = arith.constant 0 : i32
    %c0_i32_1 = arith.constant 0 : i32
    return %c0_i32, %c0_i32_0 : i32, i32
  }
  func.func @transform_2(%arg0: i32) -> (i32, i32) {
    %c0_i32 = arith.constant 0 : i32
    %c0_i32_0 = arith.constant 0 : i32
    %c0_i32_1 = arith.constant 0 : i32
    return %c0_i32, %c0_i32_0 : i32, i32
  }
  func.func @transform_3(%arg0: i32) -> (i32, i32) {
    %c0_i32 = arith.constant 0 : i32
    %c0_i32_0 = arith.constant 0 : i32
    %c0_i32_1 = arith.constant 0 : i32
    return %c0_i32, %c0_i32_0 : i32, i32
  }
  func.func @transform_4(%arg0: i32) -> (i32, i32) {
    %c0_i32 = arith.constant 0 : i32
    %c0_i32_0 = arith.constant 0 : i32
    %c0_i32_1 = arith.constant 0 : i32
    return %c0_i32, %c0_i32_0 : i32, i32
  }
  func.func @transform_5(%arg0: i32) -> (i32, i32) {
    %c0_i32 = arith.constant 0 : i32
    %c0_i32_0 = arith.constant 0 : i32
    %c0_i32_1 = arith.constant 0 : i32
    return %c0_i32, %c0_i32_0 : i32, i32
  }
  func.func @transform_6(%arg0: i32) -> (i32, i32) {
    %c0_i32 = arith.constant 0 : i32
    %c0_i32_0 = arith.constant 0 : i32
    %c0_i32_1 = arith.constant 0 : i32
    return %c0_i32, %c0_i32_0 : i32, i32
  }
  func.func @transform_7(%arg0: i32) -> (i32, i32) {
    %c0_i32 = arith.constant 0 : i32
    %c0_i32_0 = arith.constant 0 : i32
    %c0_i32_1 = arith.constant 0 : i32
    return %c0_i32, %c0_i32_0 : i32, i32
  }
  func.func @transform_8(%arg0: i32) -> (i32, i32) {
    %c0_i32 = arith.constant 0 : i32
    %c0_i32_0 = arith.constant 0 : i32
    %c0_i32_1 = arith.constant 0 : i32
    return %c0_i32, %c0_i32_0 : i32, i32
  }
  func.func @transform_9(%arg0: i32) -> (i32, i32) {
    %c0_i32 = arith.constant 0 : i32
    %c0_i32_0 = arith.constant 0 : i32
    return %arg0, %c0_i32 : i32, i32
  }
}

</mosaic_0001>

<bundles_post_ra>
// kernel: tpu_custom_call.1
= control target key start
LH: loop header
LB: loop body
LE: loop exit
PB: predicated region body
PF: predicated region fallthrough
CT: control target
= control target key end

     0   :  { %14 = vsyncpa [#allocation3], 0  ;;  %s954_s0 = inlined_call_operand.vmem [shape: bf16[16,8], index: 0, kind: input, shape index: {}]   ;;  %s955_s1 = inlined_call_operand.vmem [shape: bf16[8,64], index: 1, kind: input, shape index: {}]   ;;  %s956_s2 = inlined_call_operand.vmem [shape: f32[1,64], index: 2, kind: input, shape index: {}]   ;;  %s957_s3 = inlined_call_operand.hbm [shape: bf16[64,128], index: 3, kind: input, shape index: {}]   ;;  %s958_s4 = inlined_call_operand.vmem [shape: f32[1,128], index: 4, kind: input, shape index: {}]   ;;  %s959_s5 = inlined_call_operand.hbm [shape: bf16[128,256], index: 5, kind: input, shape index: {}]   ;;  %s960_s6 = inlined_call_operand.vmem [shape: f32[1,256], index: 6, kind: input, shape index: {}]   ;;  %s961_s7 = inlined_call_operand.hbm [shape: bf16[256,128], index: 7, kind: input, shape index: {}]   ;;  %s962_s8 = inlined_call_operand.vmem [shape: f32[1,128], index: 8, kind: input, shape index: {}]   ;;  %s963_s9 = inlined_call_operand.hbm [shape: f32[16,128], index: 9, kind: output, shape index: {}]  }
   0x1   :  { %15 = vsyncpa [#allocation6], 0 }
   0x2   :  { %16 = vsyncpa [#allocation4], 0  ;;  %s821_s30 = smov [#allocation5]   ;;  %s727_s13 = scalar_lea.hbm %s959_s5, 2048 }
   0x3   :  { %s42_s10 = sshll.u32 %s821_s30, 4  ;;  %p728_p0 = scmp.ne.s32.totalorder %s959_s5, %s727_s13  ;;  %s43_s10 = int_to_ptr.vmem [resolvable:$true] %s42_s10 }
   0x4   :  { %p731_p1 = scmp.lt.u32.totalorder %s727_s13, %s959_s5 }
   0x6   :  { %p733_p2 = pnand %p731_p1, %p728_p0 }
   0x8   :  { %736 = shalt.err (!%p733_p2)
}
   0x9   :  { %s737_s18 = scalar_lea.vmem %s43_s10, 2048  ;;  %p742_p4 = scmp.lt.s32.totalorder %s43_s10, %s43_s10 }
   0xa   :  { %p738_p3 = scmp.ne.s32.totalorder %s43_s10, %s737_s18  ;;  %p743_p5 = scmp.lt.s32.totalorder %s737_s18, %s737_s18 }
   0xc   :  { %p744_p6 = por %p743_p5, %p742_p4 }
   0xe   :  { %p745_p7 = pnand %p744_p6, %p738_p3 }
  0x10   :  { %748 = shalt.err (!%p745_p7)
}
  0x11   :  { %s822_s19 = smov 128   ;;  %s823_s20 = smov 8  }
  0x12   :  { %48 = dma.hbm_to_vmem [thread:$0]  %s959_s5, 2048, %s43_s10, [#allocation6], %s822_s19, %s822_s19, %s823_s20  }
  0x13   :  { %s824_s23 = smov [#allocation2]   ;;  %s749_s27 = scalar_lea.hbm %s957_s3, 512 }
  0x14   :  { %s28_s24 = sshll.u32 %s824_s23, 4  ;;  %p750_p8 = scmp.ne.s32.totalorder %s957_s3, %s749_s27  ;;  %s29_s24 = int_to_ptr.vmem [resolvable:$true] %s28_s24 }
  0x15   :  { %p753_p9 = scmp.lt.u32.totalorder %s749_s27, %s957_s3 }
  0x17   :  { %p755_p10 = pnand %p753_p9, %p750_p8 }
  0x19   :  { %758 = shalt.err (!%p755_p10)
}
  0x1a   :  { %s759_s12 = scalar_lea.vmem %s29_s24, 512  ;;  %p764_p12 = scmp.lt.s32.totalorder %s29_s24, %s29_s24 }
  0x1b   :  { %p760_p11 = scmp.ne.s32.totalorder %s29_s24, %s759_s12  ;;  %p765_p13 = scmp.lt.s32.totalorder %s759_s12, %s759_s12 }
  0x1d   :  { %p766_p0 = por %p765_p13, %p764_p12 }
  0x1f   :  { %p767_p1 = pnand %p766_p0, %p760_p11 }
  0x21   :  { %770 = shalt.err (!%p767_p1)
}
  0x22   :  { %s825_s5 = smov 64   ;;  %s826_s10 = smov 4  }
  0x23   :  { %34 = dma.hbm_to_vmem [thread:$0]  %s957_s3, 512, %s29_s24, [#allocation3], %s825_s5, %s825_s5, %s826_s10  }
  0x24   :  { %s827_s15 = smov [#allocation7]   ;;  %s771_s21 = scalar_lea.hbm %s961_s7, 2048 }
  0x25   :  { %s56_s16 = sshll.u32 %s827_s15, 4  ;;  %p772_p2 = scmp.ne.s32.totalorder %s961_s7, %s771_s21  ;;  %s57_s16 = int_to_ptr.vmem [resolvable:$true] %s56_s16 }
  0x26   :  { %p775_p3 = scmp.lt.u32.totalorder %s771_s21, %s961_s7 }
  0x28   :  { %p777_p4 = pnand %p775_p3, %p772_p2 }
  0x2a   :  { %780 = shalt.err (!%p777_p4)
}
  0x2b   :  { %s781_s27 = scalar_lea.vmem %s57_s16, 2048  ;;  %p786_p6 = scmp.lt.s32.totalorder %s57_s16, %s57_s16 }
  0x2c   :  { %p782_p5 = scmp.ne.s32.totalorder %s57_s16, %s781_s27  ;;  %p787_p7 = scmp.lt.s32.totalorder %s781_s27, %s781_s27 }
  0x2e   :  { %p788_p8 = por %p787_p7, %p786_p6 }
  0x30   :  { %p789_p9 = pnand %p788_p8, %p782_p5 }
  0x32   :  { %792 = shalt.err (!%p789_p9)
}
  0x33   :  { %62 = dma.hbm_to_vmem [thread:$0]  %s961_s7, 2048, %s57_s16, [#allocation6], %s825_s5, %s825_s5, %s826_s10  }
  0x34   :  { %815 = dma.done.wait [#allocation3], 512  }
  0x35   :  { %816 = vsyncadd [#allocation3], 4294966784 }
  0x36   :  { %817 = dma.done.wait [#allocation6], 4096  }
  0x37   :  { %818 = vsyncadd [#allocation6], 4294963200  ;;  %v828_v0 = vmov 0.0   ;;  %vm829_vm0 = vmmov 0   ;;  %vm94_vm1 = vcmask 1043456   ;;  %v682_v3 = vld [vmem:[%s954_s0] sm:$0xff]   ;;  %v247_v61 = vlaneseq }
  0x38   :  { %653 = vmatprep.subr.bf16.mxu0 %v828_v0  ;;  %655 = vmatprep.mubr.msk.bf16.mxu0 %vm829_vm0, %v828_v0  ;;  %v77_v1 = vld [vmem:[%s955_s1] sm:$0xf]  ;;  %vm90_vm2 = vcmask 64512   ;;  %v683_v4 = vld [vmem:[#allocation2] sm:$0xff]   ;;  %v684_v5 = vld [vmem:[#allocation2 + $0x8] sm:$0xff]   ;;  %vm181_vm3 = vcmask 523264  }
  0x39   :  { %659 = vmatprep.subr.bf16.mxu1 %v828_v0  ;;  %667 = vmatprep.mubr.msk.bf16.mxu1 %vm829_vm0, %v828_v0  ;;  %v96_v2 = vsel %vm94_vm1, %v77_v1, 0  ;;  %v685_v6 = vld [vmem:[#allocation2 + $0x10] sm:$0xff]   ;;  %v686_v7 = vld [vmem:[#allocation2 + $0x18] sm:$0xff]   ;;  %v687_v8 = vld [vmem:[#allocation5] ss:$8 sps:$4 sm:$0xff]   ;;  %v830_v34 = vmov 0  }
  0x3a   :  { %654 = vmatpush3.bf16.msra.mxu0 %v96_v2  ;;  %660 = vmatpush3.bf16.msra.mxu1 %v683_v4  ;;  %v689_v9 = vld [vmem:[#allocation5 + $0x4] ss:$8 sps:$4 sm:$0xff]   ;;  %v692_v10 = vld [vmem:[#allocation5 + $0x14] ss:$8 sps:$4 sm:$0xff]   ;;  %v690_v11 = vld [vmem:[#allocation5 + $0x10] ss:$8 sps:$4 sm:$0xff]  }
  0x3b   :  { %661 = vmatprep.subr.bf16.mxu1 %v828_v0  ;;  %337 = vmatprep.subr.bf16.mxu0 %v689_v9  ;;  %v695_v12 = vld [vmem:[#allocation5 + $0x24] ss:$8 sps:$4 sm:$0xff]   ;;  %v693_v13 = vld [vmem:[#allocation5 + $0x20] ss:$8 sps:$4 sm:$0xff]   ;;  %v698_v14 = vld [vmem:[#allocation5 + $0x34] ss:$8 sps:$4 sm:$0xff]  }
  0x3c   :  { %v696_v15 = vld [vmem:[#allocation5 + $0x30] ss:$8 sps:$4 sm:$0xff]   ;;  %v701_v16 = vld [vmem:[#allocation5 + $0x44] ss:$8 sps:$4 sm:$0xff]   ;;  %v699_v17 = vld [vmem:[#allocation5 + $0x40] ss:$8 sps:$4 sm:$0xff]  }
  0x3d   :  { %656 = vmatmul.mubr.msk.bf16.vlgmr.msra.gmra.mrb[0].mxu0 %vm90_vm2, %v682_v3  ;;  %v704_v18 = vld [vmem:[#allocation5 + $0x54] ss:$8 sps:$4 sm:$0xff]   ;;  %v702_v19 = vld [vmem:[#allocation5 + $0x50] ss:$8 sps:$4 sm:$0xff]   ;;  %v707_v30 = vld [vmem:[#allocation5 + $0x64] ss:$8 sps:$4 sm:$0xff]  }
  0x3e   :  { %662 = vmatpush3.bf16.msra.mxu1 %v684_v5  ;;  %338 = vmatpush1.bf16.msra.mxu0 %v687_v8  ;;  %v582_v20 = vld [vmem:[%s956_s2] ss:$0 sm:$0xff]  ;;  %v705_v31 = vld [vmem:[#allocation5 + $0x60] ss:$8 sps:$4 sm:$0xff]   ;;  %v710_v32 = vld [vmem:[#allocation5 + $0x74] ss:$8 sps:$4 sm:$0xff]  }
  0x3f   :  { %663 = vmatprep.subr.bf16.mxu1 %v828_v0  ;;  %339 = vmatprep.subr.bf16.mxu0 %v692_v10  ;;  %v708_v33 = vld [vmem:[#allocation5 + $0x70] ss:$8 sps:$4 sm:$0xff]   ;;  %v711_v35 = vld [vmem:[#allocation7 + $0x40] sm:$0xff]   ;;  %v713_v37 = vld [vmem:[#allocation7 + $0x48] sm:$0xff]   ;;  %v248_v62 = vshrl.u32 %v247_v61, 7  ;;  %s831_s10 = smov [#allocation8]  }
  0x40   :  { %369 = vmatprep.mubr.bf16.mxu0 %v830_v34  ;;  %v712_v36 = vld [vmem:[#allocation7] sm:$0xff]   ;;  %v714_v38 = vld [vmem:[#allocation7 + $0x8] sm:$0xff]   ;;  %v715_v39 = vld [vmem:[#allocation7 + $0x50] sm:$0xff]   ;;  %s569_s13 = sshll.u32 %s831_s10, 4  ;;  %s570_s13 = int_to_ptr.vmem [resolvable:$true] %s569_s13 }
  0x41   :  { %v716_v40 = vld [vmem:[#allocation7 + $0x10] sm:$0xff]   ;;  %v717_v41 = vld [vmem:[#allocation7 + $0x58] sm:$0xff]   ;;  %v719_v43 = vld [vmem:[#allocation7 + $0x60] sm:$0xff]   ;;  %v249_v63 = vsub.s32 0, %v248_v62  ;;  %v253_v1 = vsub.s32 1, %v248_v62  ;;  %s793_s14 = scalar_lea.vmem %s570_s13, 256  ;;  %p798_p11 = scmp.lt.s32.totalorder %s570_s13, %s570_s13 }
  0x42   :  { %664 = vmatpush3.bf16.msra.mxu1 %v685_v6  ;;  %340 = vmatpush1.bf16.msra.mxu0 %v690_v11  ;;  %v718_v42 = vld [vmem:[#allocation7 + $0x18] sm:$0xff]   ;;  %v720_v44 = vld [vmem:[#allocation7 + $0x20] sm:$0xff]   ;;  %v721_v45 = vld [vmem:[#allocation7 + $0x68] sm:$0xff]   ;;  %p794_p10 = scmp.ne.s32.totalorder %s570_s13, %s793_s14  ;;  %p799_p12 = scmp.lt.s32.totalorder %s793_s14, %s793_s14 }
  0x43   :  { %665 = vmatprep.subr.bf16.mxu1 %v828_v0  ;;  %341 = vmatprep.subr.bf16.mxu0 %v695_v12  ;;  %v585_v46 = vld [vmem:[%s958_s4] ss:$0 sm:$0xff]  ;;  %v722_v56 = vld [vmem:[#allocation7 + $0x28] sm:$0xff]   ;;  %v725_v59 = vld [vmem:[#allocation7 + $0x78] sm:$0xff]  }
  0x44   :  { %v723_v57 = vld [vmem:[#allocation7 + $0x70] sm:$0xff]   ;;  %v726_v60 = vld [vmem:[#allocation7 + $0x38] sm:$0xff]   ;;  %p800_p13 = por %p799_p12, %p798_p11 }
  0x45   :  { %v724_v58 = vld [vmem:[#allocation7 + $0x30] sm:$0xff]  }
  0x46   :  { %666 = vmatpush3.bf16.msra.mxu1 %v686_v7  ;;  %342 = vmatpush1.bf16.msra.mxu0 %v693_v13  ;;  %v245_v0 = vld [vmem:[%s960_s6] sm:$0x3]  ;;  %p801_p0 = pnand %p800_p13, %p794_p10 }
  0x47   :  { %343 = vmatprep.subr.bf16.mxu0 %v698_v14  ;;  %631 = vmatprep.subr.bf16.mxu1 %v711_v35  ;;  %v250_v2 = vrot.slane %v245_v0, %v249_v63  ;;  %v254_v3 = vrot.slane %v245_v0, %v253_v1 }
  0x4a   :  { %344 = vmatpush1.bf16.msra.mxu0 %v696_v15 }
  0x4b   :  { %345 = vmatprep.subr.bf16.mxu0 %v701_v16 }
  0x4e   :  { %346 = vmatpush1.bf16.msra.mxu0 %v699_v17 }
  0x4f   :  { %347 = vmatprep.subr.bf16.mxu0 %v704_v18 }
  0x52   :  { %348 = vmatpush1.bf16.msra.mxu0 %v702_v19  ;;  %v607_v19 = vld [vmem:[%s962_s8] ss:$0 sm:$0xff] }
  0x53   :  { %349 = vmatprep.subr.bf16.mxu0 %v707_v30 }
  0x56   :  { %350 = vmatpush1.bf16.msra.mxu0 %v705_v31 }
  0x57   :  { %351 = vmatprep.subr.bf16.mxu0 %v710_v32 }
  0x5a   :  { %352 = vmatpush1.bf16.msra.mxu0 %v708_v33 }
 0x110   :  { %v132_v21 = vpop.f32.mrb[0].mxu0 }
 0x111   :  { %v133_v22 = vadd.f32 %v582_v20, %v132_v21  ;;  %v657_v23 = vpop.f32.mrb[1].mxu0 }
 0x112   :  { %v135_v24 = vpop.f32.mrb[2].mxu0 }
 0x113   :  { %v136_v25 = vadd.f32 %v582_v20, %v135_v24  ;;  %v658_v26 = vpop.f32.mrb[3].mxu0  ;;  %v139_v27 = vmax.f32 %v133_v22, 0.0 }
 0x115   :  { %v140_v28 = vmax.f32 %v136_v25, 0.0 }
 0x117   :  { %v141_v29 = vpack.c.bf16 %v140_v28, %v139_v27 }
 0x119   :  { %668 = vmatmul.mubr.msk.bf16.vlgmr.msra.gmra.mrb[0].mxu1 %vm181_vm3, %v141_v29 }
 0x11a   :  { %632 = vmatpush3.bf16.msra.mxu1 %v712_v36 }
 0x11b   :  { %633 = vmatprep.subr.bf16.mxu1 %v713_v37 }
 0x11e   :  { %634 = vmatpush3.bf16.msra.mxu1 %v714_v38 }
 0x11f   :  { %635 = vmatprep.subr.bf16.mxu1 %v715_v39 }
 0x122   :  { %636 = vmatpush3.bf16.msra.mxu1 %v716_v40 }
 0x123   :  { %637 = vmatprep.subr.bf16.mxu1 %v717_v41 }
 0x126   :  { %638 = vmatpush3.bf16.msra.mxu1 %v718_v42 }
 0x127   :  { %639 = vmatprep.subr.bf16.mxu1 %v719_v43 }
 0x12a   :  { %640 = vmatpush3.bf16.msra.mxu1 %v720_v44 }
 0x12b   :  { %641 = vmatprep.subr.bf16.mxu1 %v721_v45 }
 0x12e   :  { %642 = vmatpush3.bf16.msra.mxu1 %v722_v56 }
 0x12f   :  { %643 = vmatprep.subr.bf16.mxu1 %v723_v57 }
 0x132   :  { %644 = vmatpush3.bf16.msra.mxu1 %v724_v58 }
 0x133   :  { %645 = vmatprep.subr.bf16.mxu1 %v725_v59 }
 0x136   :  { %646 = vmatpush3.bf16.msra.mxu1 %v726_v60 }
 0x1ec   :  { %v219_v47 = vpop.f32.mrb[0].mxu1 }
 0x1ed   :  { %v220_v48 = vadd.f32 %v585_v46, %v219_v47  ;;  %v669_v49 = vpop.f32.mrb[1].mxu1 }
 0x1ee   :  { %v222_v50 = vpop.f32.mrb[2].mxu1 }
 0x1ef   :  { %v223_v51 = vadd.f32 %v585_v46, %v222_v50  ;;  %v670_v52 = vpop.f32.mrb[3].mxu1  ;;  %v226_v53 = vmax.f32 %v220_v48, 0.0 }
 0x1f1   :  { %v227_v54 = vmax.f32 %v223_v51, 0.0 }
 0x1f3   :  { %v228_v55 = vpack.c.bf16 %v227_v54, %v226_v53 }
 0x1f5   :  { %370 = vmatmul.mubr.bf16.vlgmr.msra.gmra.mrb[4].mxu0 %v228_v55 }
 0x2c8   :  { %v371_v4 = vpop.f32.mrb[4].mxu0 }
 0x2c9   :  { %v372_v5 = vadd.f32 %v371_v4, %v250_v2  ;;  %v373_v6 = vpop.f32.mrb[5].mxu0 }
 0x2ca   :  { %v374_v7 = vadd.f32 %v373_v6, %v254_v3  ;;  %v375_v8 = vpop.f32.mrb[6].mxu0 }
 0x2cb   :  { %v376_v9 = vadd.f32 %v375_v8, %v250_v2  ;;  %v377_v10 = vpop.f32.mrb[7].mxu0  ;;  %v380_v12 = vmax.f32 %v372_v5, 0.0 }
 0x2cc   :  { %v378_v11 = vadd.f32 %v377_v10, %v254_v3  ;;  %v381_v14 = vmax.f32 %v374_v7, 0.0 }
 0x2cd   :  { %v382_v13 = vmax.f32 %v376_v9, 0.0 }
 0x2ce   :  { %v383_v15 = vmax.f32 %v378_v11, 0.0 }
 0x2cf   :  { %v384_v16 = vpack.c.bf16 %v382_v13, %v380_v12 }
 0x2d0   :  { %v385_v17 = vpack.c.bf16 %v383_v15, %v381_v14 }
 0x2d2   :  { %553 = vmatprep.mubr.bf16.mxu1 %v385_v17 }
 0x2d3   :  { %554 = vmatmul.mubr.bf16.vlgmr.msra.gmra.mrb[4].mxu1 %v384_v16 }
 0x3a6   :  { %v647_v18 = vpop.f32.mrb[4].mxu1 }
 0x3a7   :  { %v648_v20 = vpop.f32.mrb[5].mxu1 }
 0x3a8   :  { %v649_v21 = vadd.f32 %v648_v20, %v647_v18  ;;  %v650_v22 = vpop.f32.mrb[6].mxu1 }
 0x3a9   :  { %v651_v23 = vpop.f32.mrb[7].mxu1 }
 0x3aa   :  { %v556_v24 = vadd.f32 %v649_v21, %v607_v19  ;;  %v652_v25 = vadd.f32 %v651_v23, %v650_v22 }
 0x3ac   :  { %562 = vst [vmem:[#allocation8] sm:$0xff] %v556_v24  ;;  %v559_v26 = vadd.f32 %v652_v25, %v607_v19 }
 0x3ae   :  { %563 = vst [vmem:[#allocation8 + $0x8] sm:$0xff] %v559_v26 }
 0x3af   :  { %804 = shalt.err (!%p801_p0)
}
 0x3b0   :  { %s805_s16 = scalar_lea.hbm %s963_s9, 256 }
 0x3b1   :  { %p806_p1 = scmp.ne.s32.totalorder %s963_s9, %s805_s16  ;;  %p809_p2 = scmp.lt.u32.totalorder %s805_s16, %s963_s9 }
 0x3b3   :  { %p811_p3 = pnand %p809_p2, %p806_p1 }
 0x3b5   :  { %814 = shalt.err (!%p811_p3)
}
 0x3b6   :  { %575 = dma.vmem_to_hbm [thread:$0]  %s570_s13, 256, %s963_s9, [#allocation4], %s822_s19, %s822_s19, %s823_s20  }
 0x3b7   :  { %819 = dma.done.wait [#allocation4], 256  }
 0x3b8   :  { %820 = vsyncadd [#allocation4], 4294967040 }
 0x3b9   :  { %579 = vsyncpa [#allocation3], 1 }
 0x3ba   :  { %580 = vsyncpa [#allocation6], 1 }
 0x3bb   :  { %581 = vsyncpa [#allocation4], 1 }

</bundles_post_ra>
